<compile_context>
chip_gen: v5e
topology: v5e:2x2
jax: 0.10.0
libtpu: 0.0.40
codegen_flags: <defaults>
</compile_context>

<pallas_src>
import functools

import jax
import jax.numpy as jnp
from jax.experimental import pallas as pl
from jax.experimental.pallas import tpu as pltpu

_SLOT = 16  # scratch slot alignment (packed bf16 tile = 16 sublanes; also 8-aligned for f32)


def _round_up(x, m):
    return ((x + m - 1) // m) * m


# ---------------------------------------------------------------------------
# Kernel: build stacked [z ; 1 ; onehots] operand in VMEM scratch, then a
# two-matmul MLP with the final (M=1) layer on VPU + XLU.
# ---------------------------------------------------------------------------
def _make_kernel(dense_slot, table_slots):
    def kernel(idx_ref, zf_ref, wbig_ref, w2_ref, b2_ref, w3_ref, b3_ref,
               o_ref, s_ref):
        cd = s_ref.dtype                      # MXU operand dtype (bf16 or f32)
        tb = o_ref.shape[1]                   # batch tile (lane axis)

        # ---- stacked layer-1 operand: [z ; 1 ; onehot_all] -------------------
        s_ref[0:dense_slot, :] = zf_ref[...].astype(cd)
        off = dense_slot
        for t, slot in enumerate(table_slots):
            ids = idx_ref[t:t + 1, :]                                  # [1, TB] int32
            rows = jax.lax.broadcasted_iota(jnp.int32, (slot, tb), 0)  # [slot, TB]
            # rows >= V_t never match a valid index, so the slot padding is 0.
            s_ref[off:off + slot, :] = jnp.where(rows == ids, 1.0, 0.0).astype(cd)
            off += slot

        # ---- layer 1: single MXU matmul (gather + dense + b1, f32 accum) -----
        h1 = jnp.maximum(
            jnp.dot(wbig_ref[...], s_ref[...],
                    preferred_element_type=jnp.float32),
            0.0)                                                       # [128, TB] f32

        # ---- layer 2 ----------------------------------------------------------
        h2 = jnp.maximum(
            jnp.dot(w2_ref[...], h1.astype(cd),
                    preferred_element_type=jnp.float32) + b2_ref[...],
            0.0)                                                       # [64, TB] f32

        # ---- layer 3 on VPU + XLU (an M=1 matmul wastes full MXU passes) ------
        y = jnp.sum(w3_ref[...] * h2, axis=0, keepdims=True) + b3_ref[...]
        o_ref[...] = y.astype(o_ref.dtype)                             # [1, TB]

    return kernel


# ---------------------------------------------------------------------------
# Wrapper: weight folding, transposed layout, batch tiling, pallas_call
# ---------------------------------------------------------------------------
def net_embedding_forward(params, x, z, *, block_rows=2048,
                          compute_dtype=jnp.bfloat16):
    """x: [B, n_cat] int indices, z: [B, 3] float dense -> [B, 1] float32.

    compute_dtype=jnp.bfloat16 feeds the MXU bf16 operands with f32 accumulation
    (one-hots are exact; weight/activation rounding ~1e-2 absolute at these
    scales).  compute_dtype=jnp.float32 is the exact path; Mosaic's f32 matmul
    is verified in __main__ to match a Precision.HIGHEST reference to <1e-4.
    Out-of-range/negative indices yield a silent zero embedding contribution.
    """
    B, n_tables = x.shape
    zdim = z.shape[1]
    cd = compute_dtype
    w1, b1 = params["w1"], params["b1"]

    # --- fold every embedding table + dense slice + b1 into one W_big --------
    dense_slot = _round_up(zdim + 1, _SLOT)                 # z rows + ones row
    table_slots = [_round_up(t.shape[0], _SLOT) for t in params["emb"]]
    k_pad = dense_slot + sum(table_slots)

    sum_d = sum(t.shape[1] for t in params["emb"])
    wbig = jnp.zeros((128, k_pad), jnp.float32)
    wbig = wbig.at[:, 0:zdim].set(w1[sum_d:sum_d + zdim, :].T)     # dense cols
    wbig = wbig.at[:, zdim].set(b1[0])                             # folded b1 col
    off_k, off_d = dense_slot, 0
    for tbl, slot in zip(params["emb"], table_slots):
        v, d = tbl.shape
        g = jnp.dot(tbl, w1[off_d:off_d + d, :],
                    precision=jax.lax.Precision.HIGHEST).T          # [128, V_t]
        wbig = wbig.at[:, off_k:off_k + v].set(g)
        off_k += slot
        off_d += d
    wbig = wbig.astype(cd)
    w2_t = params["w2"].T.astype(cd)                               # [64, 128]
    b2_t = params["b2"].T.astype(jnp.float32)                      # [64, 1]
    w3_c = params["w3"].astype(jnp.float32)                        # [64, 1]
    b3 = params["b3"].astype(jnp.float32)                          # [1, 1]

    # --- batch tile: multiple of 256 (full MXU N width on v6e/v7x) -----------
    tb = _round_up(max(1, min(block_rows, B)), 256)
    if pl.cdiv(B, tb) < 2 and B > 256:
        tb = _round_up((B + 1) // 2, 256)      # >=2 grid steps -> both v7x TCs
    bp = _round_up(B, tb)
    grid = (bp // tb,)

    # --- transpose + pad inputs so the batch sits on the lane axis -----------
    # (latency-critical callers can precompute idx_t / zf once in this layout
    #  and skip this extra HBM round-trip)
    idx_t = jnp.zeros((n_tables, bp), jnp.int32).at[:, :B].set(x.T.astype(jnp.int32))
    zf = jnp.zeros((dense_slot, bp), jnp.float32)
    zf = zf.at[:zdim, :B].set(z.T.astype(jnp.float32))
    zf = zf.at[zdim, :].set(1.0)                 # ones row multiplying the b1 column

    def resident(a):   # full-array block, constant index_map -> stays in VMEM
        return pl.BlockSpec(a.shape, lambda i: (0, 0))

    out_row = pl.pallas_call(
        _make_kernel(dense_slot, tuple(table_slots)),
        out_shape=jax.ShapeDtypeStruct((1, bp), jnp.float32),
        grid=grid,
        in_specs=[
            pl.BlockSpec((n_tables, tb), lambda i: (0, i)),     # index tile
            pl.BlockSpec((dense_slot, tb), lambda i: (0, i)),   # [z;1;0] tile
            resident(wbig), resident(w2_t), resident(b2_t),
            resident(w3_c), resident(b3),
        ],
        out_specs=pl.BlockSpec((1, tb), lambda i: (0, i)),      # lane-dense slab
        scratch_shapes=[pltpu.VMEM((k_pad, tb), cd)],
        compiler_params=pltpu.CompilerParams(
            dimension_semantics=("parallel",),                  # shard tiles (v7x)
            vmem_limit_bytes=32 * 1024 * 1024,
        ),
    )(idx_t, zf, wbig, w2_t, b2_t, w3_c, b3)

    return out_row[0, :B][:, None]                              # [B, 1]


# ---------------------------------------------------------------------------
# Parameter init (matches nn.Embedding / nn.Linear layouts used by the kernel)
# ---------------------------------------------------------------------------
def init_params(key, vocab_size, embedding_dim=None):
    if embedding_dim is None:
        embedding_dim = [8 for _ in vocab_size]
    d_in = sum(embedding_dim) + 3

    keys = jax.random.split(key, 3 + len(vocab_size))
    params = {}
    params["emb"] = [
        jax.random.normal(keys[i], (nv + 1, ed), dtype=jnp.float32)
        for i, (nv, ed) in enumerate(zip(vocab_size, embedding_dim))
    ]

    def linear(k, fan_in, fan_out):
        kw, kb = jax.random.split(k)
        bound = 1.0 / jnp.sqrt(fan_in)
        w = jax.random.uniform(kw, (fan_in, fan_out), jnp.float32, -bound, bound)
        b = jax.random.uniform(kb, (1, fan_out), jnp.float32, -bound, bound)
        return w, b

    params["w1"], params["b1"] = linear(keys[-3], d_in, 128)
    params["w2"], params["b2"] = linear(keys[-2], 128, 64)
    params["w3"], params["b3"] = linear(keys[-1], 64, 1)
    return params, embedding_dim


# pure-JAX reference for the sanity check
def net_embedding_ref(params, x, z):
    embedded = [tbl[x[:, i]] for i, tbl in enumerate(params["emb"])]
    feat = jnp.concatenate(embedded + [z], axis=1).astype(jnp.float32)
    hp = jax.lax.Precision.HIGHEST
    h1 = jnp.maximum(jnp.dot(feat, params["w1"], precision=hp) + params["b1"], 0.0)
    h2 = jnp.maximum(jnp.dot(h1, params["w2"], precision=hp) + params["b2"], 0.0)
    return jnp.dot(h2, params["w3"], precision=hp) + params["b3"]


if __name__ == "__main__":
    key = jax.random.PRNGKey(0)
    kp, kx, kz = jax.random.split(key, 3)

    vocab_size = [10, 20, 15, 7]          # 4 categorical features, emb_dim 8 each
    params, _ = init_params(kp, vocab_size)

    B = 300                               # not a tile multiple -> exercises padding
    x = jnp.stack(
        [jax.random.randint(jax.random.fold_in(kx, i), (B,), 0, nv + 1)
         for i, nv in enumerate(vocab_size)],
        axis=1,
    ).astype(jnp.int32)                   # [B, 4], indices in [0, nv]
    z = jax.random.normal(kz, (B, 3), dtype=jnp.float32)   # [B, 3]

    y_ref = net_embedding_ref(params, x, z)

    # exact f32 path (tight check against the Precision.HIGHEST reference)
    fwd_f32 = jax.jit(functools.partial(net_embedding_forward,
                                        compute_dtype=jnp.float32))
    y32 = jax.block_until_ready(fwd_f32(params, x, z))
    assert y32.shape == (B, 1), y32.shape
    assert jnp.allclose(y32, y_ref, atol=1e-4, rtol=1e-4), \
        float(jnp.max(jnp.abs(y32 - y_ref)))

    # default bf16-MXU path (f32 accumulation; bf16 operand-rounding tolerance)
    fwd_bf16 = jax.jit(net_embedding_forward)
    y16 = jax.block_until_ready(fwd_bf16(params, x, z))
    assert y16.shape == (B, 1), y16.shape
    assert jnp.allclose(y16, y_ref, atol=5e-2, rtol=5e-2), \
        float(jnp.max(jnp.abs(y16 - y_ref)))

    print("KERNEL_OK")
</pallas_src>

<mosaic_0001>
module attributes {stable_mosaic.version = 11 : i64} {
  func.func @kernel(%arg0: i32, %arg1: memref<4x256xi32, #tpu.memory_space<vmem>>, %arg2: memref<16x256xf32, #tpu.memory_space<vmem>>, %arg3: memref<128x96xf32, #tpu.memory_space<vmem>>, %arg4: memref<64x128xf32, #tpu.memory_space<vmem>>, %arg5: memref<64x1xf32, #tpu.memory_space<vmem>>, %arg6: memref<64x1xf32, #tpu.memory_space<vmem>>, %arg7: memref<1x1xf32, #tpu.memory_space<vmem>>, %arg8: memref<1x256xf32, #tpu.memory_space<vmem>>, %arg9: memref<96x256xf32, #tpu.memory_space<vmem>>) attributes {dimension_semantics = [#tpu.dimension_semantics<parallel>], iteration_bounds = array<i64: 2>, scalar_prefetch = 0 : i64, scratch_operands = 1 : i64, tpu.core_type = #tpu.core_type<tc>, window_params = [{transform_indices = @transform_0, window_bounds = array<i64: 4, 256>}, {transform_indices = @transform_1, window_bounds = array<i64: 16, 256>}, {pipeline_mode = #tpu.pipeline_mode<synchronous>, transform_indices = @transform_2, window_bounds = array<i64: 128, 96>}, {pipeline_mode = #tpu.pipeline_mode<synchronous>, transform_indices = @transform_3, window_bounds = array<i64: 64, 128>}, {pipeline_mode = #tpu.pipeline_mode<synchronous>, transform_indices = @transform_4, window_bounds = array<i64: 64, 1>}, {pipeline_mode = #tpu.pipeline_mode<synchronous>, transform_indices = @transform_5, window_bounds = array<i64: 64, 1>}, {pipeline_mode = #tpu.pipeline_mode<synchronous>, transform_indices = @transform_6, window_bounds = array<i64: 1, 1>}, {transform_indices = @transform_7, window_bounds = array<i64: 1, 256>}]} {
    %c0 = arith.constant 0 : index
    %c0_0 = arith.constant 0 : index
    %0 = vector.load %arg2[%c0, %c0_0] : memref<16x256xf32, #tpu.memory_space<vmem>>, vector<16x256xf32>
    %c0_1 = arith.constant 0 : index
    %c0_2 = arith.constant 0 : index
    %1 = vector.load %arg9[%c0_1, %c0_2] : memref<96x256xf32, #tpu.memory_space<vmem>>, vector<16x256xf32>
    tpu.vector_store %arg9[%c0_1, %c0_2], %0 {strides = array<i32>} : memref<96x256xf32, #tpu.memory_space<vmem>>, vector<16x256xf32>,
    %c0_3 = arith.constant 0 : index
    %c0_4 = arith.constant 0 : index
    %2 = vector.load %arg1[%c0_3, %c0_4] : memref<4x256xi32, #tpu.memory_space<vmem>>, vector<1x256xi32>
    %3 = tpu.iota {dimensions = array<i32: 0>} : vector<16x256xi32>
    %4 = vector.broadcast %2 : vector<1x256xi32> to vector<16x256xi32>
    %5 = arith.cmpi eq, %3, %4 : vector<16x256xi32>
    %cst = arith.constant 1.000000e+00 : f32
    %cst_5 = arith.constant 0.000000e+00 : f32
    %6 = vector.broadcast %cst : f32 to vector<16x256xf32>
    %7 = vector.broadcast %cst_5 : f32 to vector<16x256xf32>
    %8 = arith.select %5, %6, %7 : vector<16x256xi1>, vector<16x256xf32>
    %c16 = arith.constant 16 : index
    %c0_6 = arith.constant 0 : index
    %9 = vector.load %arg9[%c16, %c0_6] : memref<96x256xf32, #tpu.memory_space<vmem>>, vector<16x256xf32>
    tpu.vector_store %arg9[%c16, %c0_6], %8 {strides = array<i32>} : memref<96x256xf32, #tpu.memory_space<vmem>>, vector<16x256xf32>,
    %c1 = arith.constant 1 : index
    %c0_7 = arith.constant 0 : index
    %10 = vector.load %arg1[%c1, %c0_7] : memref<4x256xi32, #tpu.memory_space<vmem>>, vector<1x256xi32>
    %11 = tpu.iota {dimensions = array<i32: 0>} : vector<32x256xi32>
    %12 = vector.broadcast %10 : vector<1x256xi32> to vector<32x256xi32>
    %13 = arith.cmpi eq, %11, %12 : vector<32x256xi32>
    %cst_8 = arith.constant 1.000000e+00 : f32
    %cst_9 = arith.constant 0.000000e+00 : f32
    %14 = vector.broadcast %cst_8 : f32 to vector<32x256xf32>
    %15 = vector.broadcast %cst_9 : f32 to vector<32x256xf32>
    %16 = arith.select %13, %14, %15 : vector<32x256xi1>, vector<32x256xf32>
    %c32 = arith.constant 32 : index
    %c0_10 = arith.constant 0 : index
    %17 = vector.load %arg9[%c32, %c0_10] : memref<96x256xf32, #tpu.memory_space<vmem>>, vector<32x256xf32>
    tpu.vector_store %arg9[%c32, %c0_10], %16 {strides = array<i32>} : memref<96x256xf32, #tpu.memory_space<vmem>>, vector<32x256xf32>,
    %c2 = arith.constant 2 : index
    %c0_11 = arith.constant 0 : index
    %18 = vector.load %arg1[%c2, %c0_11] : memref<4x256xi32, #tpu.memory_space<vmem>>, vector<1x256xi32>
    %19 = tpu.iota {dimensions = array<i32: 0>} : vector<16x256xi32>
    %20 = vector.broadcast %18 : vector<1x256xi32> to vector<16x256xi32>
    %21 = arith.cmpi eq, %19, %20 : vector<16x256xi32>
    %cst_12 = arith.constant 1.000000e+00 : f32
    %cst_13 = arith.constant 0.000000e+00 : f32
    %22 = vector.broadcast %cst_12 : f32 to vector<16x256xf32>
    %23 = vector.broadcast %cst_13 : f32 to vector<16x256xf32>
    %24 = arith.select %21, %22, %23 : vector<16x256xi1>, vector<16x256xf32>
    %c64 = arith.constant 64 : index
    %c0_14 = arith.constant 0 : index
    %25 = vector.load %arg9[%c64, %c0_14] : memref<96x256xf32, #tpu.memory_space<vmem>>, vector<16x256xf32>
    tpu.vector_store %arg9[%c64, %c0_14], %24 {strides = array<i32>} : memref<96x256xf32, #tpu.memory_space<vmem>>, vector<16x256xf32>,
    %c3 = arith.constant 3 : index
    %c0_15 = arith.constant 0 : index
    %26 = vector.load %arg1[%c3, %c0_15] : memref<4x256xi32, #tpu.memory_space<vmem>>, vector<1x256xi32>
    %27 = tpu.iota {dimensions = array<i32: 0>} : vector<16x256xi32>
    %28 = vector.broadcast %26 : vector<1x256xi32> to vector<16x256xi32>
    %29 = arith.cmpi eq, %27, %28 : vector<16x256xi32>
    %cst_16 = arith.constant 1.000000e+00 : f32
    %cst_17 = arith.constant 0.000000e+00 : f32
    %30 = vector.broadcast %cst_16 : f32 to vector<16x256xf32>
    %31 = vector.broadcast %cst_17 : f32 to vector<16x256xf32>
    %32 = arith.select %29, %30, %31 : vector<16x256xi1>, vector<16x256xf32>
    %c80 = arith.constant 80 : index
    %c0_18 = arith.constant 0 : index
    %33 = vector.load %arg9[%c80, %c0_18] : memref<96x256xf32, #tpu.memory_space<vmem>>, vector<16x256xf32>
    tpu.vector_store %arg9[%c80, %c0_18], %32 {strides = array<i32>} : memref<96x256xf32, #tpu.memory_space<vmem>>, vector<16x256xf32>,
    %c0_19 = arith.constant 0 : index
    %c0_20 = arith.constant 0 : index
    %34 = vector.load %arg3[%c0_19, %c0_20] : memref<128x96xf32, #tpu.memory_space<vmem>>, vector<128x96xf32>
    %c0_21 = arith.constant 0 : index
    %c0_22 = arith.constant 0 : index
    %35 = vector.load %arg9[%c0_21, %c0_22] : memref<96x256xf32, #tpu.memory_space<vmem>>, vector<96x256xf32>
    %cst_23 = arith.constant dense<0.000000e+00> : vector<128x256xf32>
    %36 = tpu.matmul %34, %35, %cst_23 {dimension_numbers = #tpu.dot_dimension_numbers<[1], [0], [0], [1], [0, 0, 1, 1], [], []>} : vector<128x96xf32>, vector<96x256xf32>, vector<128x256xf32> -> vector<128x256xf32>
    %cst_24 = arith.constant 0.000000e+00 : f32
    %37 = vector.broadcast %cst_24 : f32 to vector<128x256xf32>
    %38 = arith.maximumf %36, %37 : vector<128x256xf32>
    %c0_25 = arith.constant 0 : index
    %c0_26 = arith.constant 0 : index
    %39 = vector.load %arg4[%c0_25, %c0_26] : memref<64x128xf32, #tpu.memory_space<vmem>>, vector<64x128xf32>
    %cst_27 = arith.constant dense<0.000000e+00> : vector<64x256xf32>
    %40 = tpu.matmul %39, %38, %cst_27 {dimension_numbers = #tpu.dot_dimension_numbers<[1], [0], [0], [1], [0, 0, 1, 1], [], []>} : vector<64x128xf32>, vector<128x256xf32>, vector<64x256xf32> -> vector<64x256xf32>
    %c0_28 = arith.constant 0 : index
    %c0_29 = arith.constant 0 : index
    %41 = vector.load %arg5[%c0_28, %c0_29] : memref<64x1xf32, #tpu.memory_space<vmem>>, vector<64x1xf32>
    %42 = vector.broadcast %41 : vector<64x1xf32> to vector<64x256xf32>
    %43 = arith.addf %40, %42 : vector<64x256xf32>
    %cst_30 = arith.constant 0.000000e+00 : f32
    %44 = vector.broadcast %cst_30 : f32 to vector<64x256xf32>
    %45 = arith.maximumf %43, %44 : vector<64x256xf32>
    %c0_31 = arith.constant 0 : index
    %c0_32 = arith.constant 0 : index
    %46 = vector.load %arg6[%c0_31, %c0_32] : memref<64x1xf32, #tpu.memory_space<vmem>>, vector<64x1xf32>
    %47 = vector.broadcast %46 : vector<64x1xf32> to vector<64x256xf32>
    %48 = arith.mulf %47, %45 : vector<64x256xf32>
    %cst_33 = arith.constant dense<0.000000e+00> : vector<256xf32>
    %49 = vector.multi_reduction <add>, %48, %cst_33 [0] : vector<64x256xf32> to vector<256xf32>
    %50 = vector.shape_cast %49 : vector<256xf32> to vector<1x256xf32>
    %c0_34 = arith.constant 0 : index
    %c0_35 = arith.constant 0 : index
    %51 = vector.load %arg7[%c0_34, %c0_35] : memref<1x1xf32, #tpu.memory_space<vmem>>, vector<1x1xf32>
    %52 = vector.broadcast %51 : vector<1x1xf32> to vector<1x256xf32>
    %53 = arith.addf %50, %52 : vector<1x256xf32>
    %c0_36 = arith.constant 0 : index
    %c0_37 = arith.constant 0 : index
    %54 = vector.load %arg8[%c0_36, %c0_37] : memref<1x256xf32, #tpu.memory_space<vmem>>, vector<1x256xf32>
    tpu.vector_store %arg8[%c0_36, %c0_37], %53 {strides = array<i32>} : memref<1x256xf32, #tpu.memory_space<vmem>>, vector<1x256xf32>,
    return
  }
  func.func @transform_0(%arg0: i32) -> (i32, i32) {
    %c0_i32 = arith.constant 0 : i32
    %c0_i32_0 = arith.constant 0 : i32
    return %c0_i32, %arg0 : i32, i32
  }
  func.func @transform_1(%arg0: i32) -> (i32, i32) {
    %c0_i32 = arith.constant 0 : i32
    %c0_i32_0 = arith.constant 0 : i32
    return %c0_i32, %arg0 : i32, i32
  }
  func.func @transform_2(%arg0: i32) -> (i32, i32) {
    %c0_i32 = arith.constant 0 : i32
    %c0_i32_0 = arith.constant 0 : i32
    %c0_i32_1 = arith.constant 0 : i32
    return %c0_i32, %c0_i32_0 : i32, i32
  }
  func.func @transform_3(%arg0: i32) -> (i32, i32) {
    %c0_i32 = arith.constant 0 : i32
    %c0_i32_0 = arith.constant 0 : i32
    %c0_i32_1 = arith.constant 0 : i32
    return %c0_i32, %c0_i32_0 : i32, i32
  }
  func.func @transform_4(%arg0: i32) -> (i32, i32) {
    %c0_i32 = arith.constant 0 : i32
    %c0_i32_0 = arith.constant 0 : i32
    %c0_i32_1 = arith.constant 0 : i32
    return %c0_i32, %c0_i32_0 : i32, i32
  }
  func.func @transform_5(%arg0: i32) -> (i32, i32) {
    %c0_i32 = arith.constant 0 : i32
    %c0_i32_0 = arith.constant 0 : i32
    %c0_i32_1 = arith.constant 0 : i32
    return %c0_i32, %c0_i32_0 : i32, i32
  }
  func.func @transform_6(%arg0: i32) -> (i32, i32) {
    %c0_i32 = arith.constant 0 : i32
    %c0_i32_0 = arith.constant 0 : i32
    %c0_i32_1 = arith.constant 0 : i32
    return %c0_i32, %c0_i32_0 : i32, i32
  }
  func.func @transform_7(%arg0: i32) -> (i32, i32) {
    %c0_i32 = arith.constant 0 : i32
    %c0_i32_0 = arith.constant 0 : i32
    return %c0_i32, %arg0 : i32, i32
  }
}

</mosaic_0001>

<bundles_post_ra>
// kernel: net_embedding_forward.1
= control target key start
LH: loop header
LB: loop body
LE: loop exit
PB: predicated region body
PF: predicated region fallthrough
CT: control target
= control target key end

     0   :  { %s1435_s0 = inlined_call_operand.vmem [shape: s32[4,512], index: 0, kind: input, shape index: {}]   ;;  %s1436_s1 = inlined_call_operand.vmem [shape: f32[16,512], index: 1, kind: input, shape index: {}]   ;;  %s1437_s2 = inlined_call_operand.vmem [shape: f32[128,96], index: 2, kind: input, shape index: {}]   ;;  %s1438_s3 = inlined_call_operand.vmem [shape: f32[64,128], index: 3, kind: input, shape index: {}]   ;;  %s1439_s4 = inlined_call_operand.vmem [shape: f32[64,1], index: 4, kind: input, shape index: {}]   ;;  %s1440_s5 = inlined_call_operand.vmem [shape: f32[64,1], index: 5, kind: input, shape index: {}]   ;;  %s1441_s6 = inlined_call_operand.<no memory space> [shape: f32[1,1], index: 6, kind: input, shape index: {}]   ;;  %s1442_s7 = inlined_call_operand.vmem [shape: f32[1,512], index: 7, kind: output, shape index: {}]  }
   0x1   :  { %v12_v0 = vstv %s1441_s6 }
   0x2   :  { %13 = vst [vmem:[#allocation3] sm:$0x1] %v12_v0 }
   0x3   :  { %s1168_s26 = smov 0   ;;  %s1170_s27 = smov 0  }
   0x4   :  { %s1172_s28 = smov 0  }
   0x5 LB: > { %s1000_s6 = sadd.s32 4294967295, %s1121_s28   ;;  %s1185_s29 = sadd.s32 1, %s1121_s28   ;;  %s1121_s28 = sphi %s1172_s28, %s1445_s28   ;;  %s1117_s27 = sphi %s1170_s27, %s1444_s27   ;;  %s1113_s26 = sphi %s1168_s26, %s1443_s26  }
   0x6   : > { %s49_s30 = ssub.s32 %s1121_s28, %s1185_s29  ;;  %s52_s8 = sadd.s32 1, %s1117_s27 }
   0x7   : > { %p50_p0 = scmp.eq.s32.totalorder %s49_s30, 0  ;;  %p59_p1 = scmp.ne.s32.totalorder %s1117_s27, %s1113_s26 }
   0x8   : > { %p60_p2 = scmp.eq.s32.totalorder %s1121_s28, 0  ;;  %p1003_p4 = scmp.ge.s32.totalorder %s1121_s28, 2 }
   0x9   : > { %s1194_s9 = scalar_select %p50_p0, %s1117_s27, %s52_s8  }
   0xa   : > { %p61_p3 = por %p60_p2, %p59_p1  ;;  %231 = sbr.rel (%p1003_p4) target bundleno = 23 (0x17), region = 36 }
   0xf   : > { %243 = sbr.rel (!%p61_p3) target bundleno = 23 (0x17), region = 44  ;;  %s245_s10 = sand.u32 (%p61_p3), 1, %s1117_s27  }
  0x10   : > { %s1049_s11 = sshll.u32 (%p61_p3), %s1121_s28, 4  ;;  %s1004_s12 = sshll.u32 (%p61_p3), %s245_s10, 5 }
  0x11   : > { %s250_s15 = scalar_lea.vmem (%p61_p3), %s1436_s1, %s1049_s11  ;;  %s247_s16 = scalar_lea.vmem (%p61_p3), [#allocation4], %s1004_s12 }
  0x12   : > { %v263_v1 = vld [vmem:[%s250_s15] sm:$0xff] (%p61_p3)  ;;  %v265_v2 = vld [vmem:[%s250_s15 + $0x8] sm:$0xff] (%p61_p3) }
  0x13   : > { %v267_v3 = vld [vmem:[%s250_s15 + $0x20] sm:$0xff] (%p61_p3)  ;;  %264 = vst [vmem:[%s247_s16] sm:$0xff] (%p61_p3), %v263_v1  ;;  %v269_v4 = vld [vmem:[%s250_s15 + $0x28] sm:$0xff] (%p61_p3) }
  0x14   : > { %266 = vst [vmem:[%s247_s16 + $0x8] sm:$0xff] %v265_v2 }
  0x15   : > { %268 = vst [vmem:[%s247_s16 + $0x10] sm:$0xff] %v267_v3 }
  0x16   : > { %270 = vst [vmem:[%s247_s16 + $0x18] sm:$0xff] %v269_v4 }
  0x17 PF: > { %p1007_p5 = scmp.ge.s32.totalorder %s1121_s28, 1  ;;  %p275_p6 = scmp.lt.s32.totalorder %s1121_s28, 3 }
  0x19   : > { %p276_p7 = pnand %p1007_p5, %p275_p6 }
  0x1a   : > { %s1009_s17 = sshll.u32 (!%p276_p7), %s1000_s6, 1  ;;  %s282_s22 = sand.u32 (!%p276_p7), 1, %s1113_s26  }
  0x1b   : > { %279 = sbr.rel (%p276_p7) target bundleno = 555 (0x22b), region = 67  ;;  %p318_p8 = scmp.lt.s32.totalorder (!%p276_p7), %s1009_s17, 3 }
  0x1c   : > { %s1008_s23 = sshll.u32 (!%p276_p7), %s282_s22, 5 }
  0x1d   : > { %s284_s24 = scalar_lea.vmem (!%p276_p7), [#allocation4], %s1008_s23 }
  0x20   : > { %v338_v5 = vlaneseq  ;;  %s1447_s17 = smov (!%p318_p8, %s1009_s17), 3  ;;  %v1123_v15 = vmov 1.0   ;;  %v331_v23 = vld [vmem:[%s284_s24 + $0x10] sm:$0xff]  ;;  %v332_v24 = vld [vmem:[%s284_s24 + $0x18] sm:$0xff]  ;;  %v329_v25 = vld [vmem:[%s284_s24] sm:$0xff] }
  0x21   : > { %s1010_s18 = sshll.u32 %s1447_s17, 2  ;;  %v330_v26 = vld [vmem:[%s284_s24 + $0x8] sm:$0xff]  ;;  %v417_v27 = vld [vmem:[%s1437_s2] sm:$0xff]  ;;  %v420_v30 = vld [vmem:[%s1437_s2 + $0x18] sm:$0xff]  ;;  %s327_s28 = scalar_lea.vmem %s1442_s7, %s1447_s17 }
  0x22   : > { %v339_v6 = vshrl.u32 %v338_v5, 7  ;;  %s1213_s21 = scalar_lea.vmem %s1435_s0, %s1010_s18  ;;  %v418_v28 = vld [vmem:[%s1437_s2 + $0x8] sm:$0xff]  ;;  %v419_v29 = vld [vmem:[%s1437_s2 + $0x10] sm:$0xff]  ;;  %v421_v31 = vld [vmem:[%s1437_s2 + $0x20] sm:$0xff] }
  0x23   : > { %v1014_v8 = vld [vmem:[%s1213_s21 + $0x3] ss:$4 sm:$0x3]  ;;  %v1013_v9 = vld [vmem:[%s1213_s21 + $0x2] ss:$4 sm:$0x3] }
  0x24   : > { %v340_v7 = vadd.s32 8, %v339_v6  ;;  %v403_v10 = vperm.slane %v1014_v8, 0  ;;  %v404_v11 = vperm.slane %v1014_v8, 1  ;;  %v387_v12 = vperm.slane %v1013_v9, 0  ;;  %v422_v32 = vld [vmem:[%s1437_s2 + $0x28] sm:$0xff]  ;;  %v423_v33 = vld [vmem:[%s1437_s2 + $0x30] sm:$0xff] }
  0x25   : > { %v388_v13 = vperm.slane %v1013_v9, 1  ;;  %v1012_v14 = vld [vmem:[%s1213_s21 + $0x1] ss:$4 sm:$0x3]  ;;  %v358_v16 = vadd.s32 24, %v339_v6  ;;  %v357_v19 = vadd.s32 16, %v339_v6 }
  0x26   : > { %vm407_vm0 = vcmp.eq.s32.totalorder %v340_v7, %v403_v10  ;;  %vm408_vm1 = vcmp.eq.s32.totalorder %v340_v7, %v404_v11  ;;  %vm405_vm2 = vcmp.eq.s32.totalorder %v339_v6, %v403_v10  ;;  %vm406_vm3 = vcmp.eq.s32.totalorder %v339_v6, %v404_v11  ;;  %v337_v20 = vld [vmem:[%s1213_s21] ss:$4 sm:$0x3]  ;;  %v424_v34 = vld [vmem:[%s1437_s2 + $0x38] sm:$0xff]  ;;  %v426_v36 = vld [vmem:[%s1437_s2 + $0x48] sm:$0xff] }
  0x27   : > { %1050 = vmatpush.msk.msra.mxu0 %vm407_vm0, %v1123_v15  ;;  %1060 = vmatpush.msk.msra.mxu1 %vm408_vm1, %v1123_v15  ;;  %vm391_vm4 = vcmp.eq.s32.totalorder %v340_v7, %v387_v12  ;;  %vm392_vm5 = vcmp.eq.s32.totalorder %v340_v7, %v388_v13  ;;  %v359_v17 = vperm.slane %v1012_v14, 0  ;;  %v360_v18 = vperm.slane %v1012_v14, 1  ;;  %v425_v35 = vld [vmem:[%s1437_s2 + $0x40] sm:$0xff]  ;;  %v427_v37 = vld [vmem:[%s1437_s2 + $0x50] sm:$0xff]  ;;  %v428_v38 = vld [vmem:[%s1437_s2 + $0x58] sm:$0xff] }
  0x28   : > { %vm389_vm6 = vcmp.eq.s32.totalorder %v339_v6, %v387_v12  ;;  %vm390_vm7 = vcmp.eq.s32.totalorder %v339_v6, %v388_v13  ;;  %v341_v21 = vperm.slane %v337_v20, 0  ;;  %v342_v22 = vperm.slane %v337_v20, 1  ;;  %v429_v39 = vld [vmem:[%s1437_s2 + $0x60] sm:$0xff]  ;;  %v430_v40 = vld [vmem:[%s1437_s2 + $0x68] sm:$0xff]  ;;  %v431_v41 = vld [vmem:[%s1437_s2 + $0x70] sm:$0xff] }
  0x29   : > { %1051 = vmatpush.msk.msra.mxu0 %vm405_vm2, %v1123_v15  ;;  %1061 = vmatpush.msk.msra.mxu1 %vm406_vm3, %v1123_v15  ;;  %vm367_vm8 = vcmp.eq.s32.totalorder %v358_v16, %v359_v17  ;;  %vm368_vm9 = vcmp.eq.s32.totalorder %v358_v16, %v360_v18  ;;  %vm365_vm10 = vcmp.eq.s32.totalorder %v357_v19, %v359_v17  ;;  %v432_v42 = vld [vmem:[%s1437_s2 + $0x78] sm:$0xff]  ;;  %v676_v10 = vld [vmem:[%s1439_s4] sm:$0xff]  ;;  %v1124_v11 = vmov 0   ;;  %v678_v16 = vld [vmem:[%s1439_s4 + $0x10] sm:$0xff] }
  0x2a   : > { %vm366_vm11 = vcmp.eq.s32.totalorder %v357_v19, %v360_v18  ;;  %vm363_vm12 = vcmp.eq.s32.totalorder %v340_v7, %v359_v17  ;;  %vm364_vm13 = vcmp.eq.s32.totalorder %v340_v7, %v360_v18  ;;  %vm361_vm14 = vcmp.eq.s32.totalorder %v339_v6, %v359_v17  ;;  %1096 = vset.pattern.permute.xlu0 %v1124_v11 }
  0x2b   : > { %1052 = vmatpush.msk.msra.mxu0 %vm391_vm4, %v1123_v15  ;;  %1062 = vmatpush.msk.msra.mxu1 %vm392_vm5, %v1123_v15  ;;  %vm362_vm15 = vcmp.eq.s32.totalorder %v339_v6, %v360_v18  ;;  %vm345_vm0 = vcmp.eq.s32.totalorder %v340_v7, %v341_v21  ;;  %vm346_vm1 = vcmp.eq.s32.totalorder %v340_v7, %v342_v22  ;;  %vm457_vm4 = vcmask 785408  }
  0x2c   : > { %vm343_vm2 = vcmp.eq.s32.totalorder %v339_v6, %v341_v21  ;;  %vm344_vm3 = vcmp.eq.s32.totalorder %v339_v6, %v342_v22  ;;  %1097 = vset.pattern.permute.xlu1 %v1124_v11  ;;  %686 = vperm.xlu0 %1096, %v676_v10   ;;  %v677_v21 = vld [vmem:[%s1439_s4 + $0x8] sm:$0xff]  ;;  %vm924_vm5 = vcmask 1040384  }
  0x2d   : > { %1053 = vmatpush.msk.msra.mxu0 %vm389_vm6, %v1123_v15  ;;  %1063 = vmatpush.msk.msra.mxu1 %vm390_vm7, %v1123_v15  ;;  %vm929_vm6 = vcmp.lt.s32.totalorder %v338_v5, 256 }
  0x2e   : > { %1098 = vset.pattern.permute.xlu2 %v1124_v11  ;;  %696 = vperm.xlu1 %1097, %v678_v16  }
  0x2f   : > { %1054 = vmatpush.msk.msra.mxu0 %vm367_vm8, %v1123_v15  ;;  %1064 = vmatpush.msk.msra.mxu1 %vm368_vm9, %v1123_v15 }
  0x31   : > { %1055 = vmatpush.msk.msra.mxu0 %vm365_vm10, %v1123_v15  ;;  %1065 = vmatpush.msk.msra.mxu1 %vm366_vm11, %v1123_v15 }
  0x33   : > { %1056 = vmatpush.msk.msra.mxu0 %vm363_vm12, %v1123_v15  ;;  %1066 = vmatpush.msk.msra.mxu1 %vm364_vm13, %v1123_v15 }
  0x34   : > { %691 = vperm.xlu0 %1096, %v677_v21  }
  0x35   : > { %1057 = vmatpush.msk.msra.mxu0 %vm361_vm14, %v1123_v15  ;;  %1067 = vmatpush.msk.msra.mxu1 %vm362_vm15, %v1123_v15 }
  0x37   : > { %1058 = vmatpush.msk.msra.mxu0 %vm345_vm0, %v1123_v15  ;;  %1068 = vmatpush.msk.msra.mxu1 %vm346_vm1, %v1123_v15 }
  0x39   : > { %1059 = vmatpush.msk.msra.mxu0 %vm343_vm2, %v1123_v15  ;;  %1069 = vmatpush.msk.msra.mxu1 %vm344_vm3, %v1123_v15 }
  0x3b   : > { %520 = vmatpush.msra.mxu0 %v331_v23  ;;  %585 = vmatpush.msra.mxu1 %v332_v24 }
  0x3d   : > { %521 = vmatpush.msra.mxu0 %v329_v25  ;;  %586 = vmatpush.msra.mxu1 %v330_v26  ;;  %v679_v26 = vld [vmem:[%s1439_s4 + $0x18] sm:$0xff] }
  0x3e   : > { %1015 = vmatmul.msk.f32.vlgmr.msra.gmra.mxu0 %vm457_vm4, %v417_v27  ;;  %1031 = vmatmul.msk.f32.vlgmr.msra.gmra.mxu1 %vm457_vm4, %v417_v27 }
  0x3f   : > { %701 = vperm.xlu1 %1097, %v679_v26  }
  0x46   : > { %1016 = vmatmul.msk.f32.gmra.mxu0 %vm457_vm4, %v418_v28  ;;  %1032 = vmatmul.msk.f32.gmra.mxu1 %vm457_vm4, %v418_v28 }
  0x4e   : > { %1017 = vmatmul.msk.f32.gmra.mxu0 %vm457_vm4, %v419_v29  ;;  %1033 = vmatmul.msk.f32.gmra.mxu1 %vm457_vm4, %v419_v29 }
  0x56   : > { %1018 = vmatmul.msk.f32.gmra.mxu0 %vm457_vm4, %v420_v30  ;;  %1034 = vmatmul.msk.f32.gmra.mxu1 %vm457_vm4, %v420_v30 }
  0x5e   : > { %1019 = vmatmul.msk.f32.gmra.mxu0 %vm457_vm4, %v421_v31  ;;  %1035 = vmatmul.msk.f32.gmra.mxu1 %vm457_vm4, %v421_v31  ;;  %v823_v31 = vld [vmem:[%s1440_s5 + $0x8] sm:$0xff] }
  0x5f   : > { %837 = vperm.xlu0 %1096, %v823_v31  }
  0x66   : > { %1020 = vmatmul.msk.f32.gmra.mxu0 %vm457_vm4, %v422_v32  ;;  %1036 = vmatmul.msk.f32.gmra.mxu1 %vm457_vm4, %v422_v32 }
  0x6e   : > { %1021 = vmatmul.msk.f32.gmra.mxu0 %vm457_vm4, %v423_v33  ;;  %1037 = vmatmul.msk.f32.gmra.mxu1 %vm457_vm4, %v423_v33 }
  0x76   : > { %1022 = vmatmul.msk.f32.gmra.mxu0 %vm457_vm4, %v424_v34  ;;  %1038 = vmatmul.msk.f32.gmra.mxu1 %vm457_vm4, %v424_v34 }
  0x7e   : > { %1023 = vmatmul.msk.f32.gmra.mxu0 %vm457_vm4, %v425_v35  ;;  %1039 = vmatmul.msk.f32.gmra.mxu1 %vm457_vm4, %v425_v35 }
  0x86   : > { %1024 = vmatmul.msk.f32.gmra.mxu0 %vm457_vm4, %v426_v36  ;;  %1040 = vmatmul.msk.f32.gmra.mxu1 %vm457_vm4, %v426_v36  ;;  %v824_v36 = vld [vmem:[%s1440_s5 + $0x10] sm:$0xff] }
  0x87   : > { %842 = vperm.xlu1 %1097, %v824_v36  }
  0x8e   : > { %1025 = vmatmul.msk.f32.gmra.mxu0 %vm457_vm4, %v427_v37  ;;  %1041 = vmatmul.msk.f32.gmra.mxu1 %vm457_vm4, %v427_v37 }
  0x96   : > { %1026 = vmatmul.msk.f32.gmra.mxu0 %vm457_vm4, %v428_v38  ;;  %1042 = vmatmul.msk.f32.gmra.mxu1 %vm457_vm4, %v428_v38 }
  0x9e   : > { %1027 = vmatmul.msk.f32.gmra.mxu0 %vm457_vm4, %v429_v39  ;;  %1043 = vmatmul.msk.f32.gmra.mxu1 %vm457_vm4, %v429_v39  ;;  %v687_v11 = vpop.permute.xlu0 %686 }
  0xa6   : > { %1028 = vmatmul.msk.f32.gmra.mxu0 %vm457_vm4, %v430_v40  ;;  %1044 = vmatmul.msk.f32.gmra.mxu1 %vm457_vm4, %v430_v40  ;;  %v692_v16 = vpop.permute.xlu0 %691 }
  0xae   : > { %1029 = vmatmul.msk.f32.gmra.mxu0 %vm457_vm4, %v431_v41  ;;  %1045 = vmatmul.msk.f32.gmra.mxu1 %vm457_vm4, %v431_v41  ;;  %v825_v41 = vld [vmem:[%s1440_s5 + $0x18] sm:$0xff] }
  0xaf   : > { %847 = vperm.xlu0 %1096, %v825_v41  }
  0xb6   : > { %1030 = vmatmul.msk.f32.gmra.mxu0 %vm457_vm4, %v432_v42  ;;  %1046 = vmatmul.msk.f32.gmra.mxu1 %vm457_vm4, %v432_v42 }
  0xbb   : > { %v1300_v43 = vpop.f32.mrf.mxu0  ;;  %v1302_v44 = vpop.f32.mrf.mxu1 }
  0xc3   : > { %v1304_v45 = vpop.f32.mrf.mxu0  ;;  %v1306_v46 = vpop.f32.mrf.mxu1 }
  0xcb   : > { %v1308_v47 = vpop.f32.mrf.mxu0  ;;  %v1310_v48 = vpop.f32.mrf.mxu1 }
  0xd1   : > { %v838_v21 = vpop.permute.xlu0 %837 }
  0xd3   : > { %v1312_v49 = vpop.f32.mrf.mxu0  ;;  %v1314_v50 = vpop.f32.mrf.mxu1 }
  0xdb   : > { %v1316_v51 = vpop.f32.mrf.mxu0  ;;  %v1318_v52 = vpop.f32.mrf.mxu1 }
  0xdc   : > { %v644_v42 = vmax.f32 %v1316_v51, 0.0  ;;  %v638_v51 = vmax.f32 %v1304_v45, 0.0  ;;  %v827_v45 = vld [vmem:[%s1440_s5 + $0x28] sm:$0xff] }
  0xe3   : > { %v1320_v53 = vpop.f32.mrf.mxu0  ;;  %v1322_v54 = vpop.f32.mrf.mxu1 }
  0xe4   : > { %v646_v39 = vmax.f32 %v1320_v53, 0.0  ;;  %v647_v40 = vmax.f32 %v1322_v54, 0.0  ;;  %v682_v53 = vld [vmem:[%s1439_s4 + $0x30] sm:$0xff]  ;;  %v640_v54 = vmax.f32 %v1308_v47, 0.0  ;;  %v668_v47 = vld [vmem:[%s1438_s3] sm:$0xff] }
  0xe5   : > { %716 = vperm.xlu1 %1097, %v682_v53  }
  0xeb   : > { %v1324_v55 = vpop.f32.mrf.mxu0  ;;  %v1326_v56 = vpop.f32.mrf.mxu1 }
  0xec   : > { %v648_v37 = vmax.f32 %v1324_v55, 0.0  ;;  %v649_v38 = vmax.f32 %v1326_v56, 0.0  ;;  %v642_v55 = vmax.f32 %v1312_v49, 0.0  ;;  %v643_v56 = vmax.f32 %v1314_v50, 0.0  ;;  %v683_v49 = vld [vmem:[%s1439_s4 + $0x38] sm:$0xff] }
  0xed   : > { %v636_v50 = vmax.f32 %v1300_v43, 0.0  ;;  %721 = vperm.xlu0 %1096, %v683_v49   ;;  %v680_v43 = vld [vmem:[%s1439_s4 + $0x20] sm:$0xff]  ;;  %857 = vperm.xlu1 %1097, %v827_v45  }
  0xee   : > { %706 = vperm.xlu2 %1098, %v680_v43  }
  0xf3   : > { %v1328_v57 = vpop.f32.mrf.mxu0  ;;  %v1330_v58 = vpop.f32.mrf.mxu1 }
  0xf4   : > { %v650_v34 = vmax.f32 %v1328_v57, 0.0  ;;  %v651_v35 = vmax.f32 %v1330_v58, 0.0  ;;  %v645_v57 = vmax.f32 %v1318_v52, 0.0  ;;  %v641_v58 = vmax.f32 %v1310_v48, 0.0  ;;  %v912_v48 = vld [vmem:[#allocation3] sm:$0x1] }
  0xf5   : > { %v639_v52 = vmax.f32 %v1306_v46, 0.0  ;;  %v669_v46 = vld [vmem:[%s1438_s3 + $0x8] sm:$0xff]  ;;  %915 = vperm.xlu1 %1097, %v912_v48  }
  0xfb   : > { %v547_v59 = vpop.f32.mrf.mxu0  ;;  %v612_v60 = vpop.f32.mrf.mxu1 }
  0xfc   : > { %v652_v32 = vmax.f32 %v547_v59, 0.0  ;;  %v653_v33 = vmax.f32 %v612_v60, 0.0  ;;  %v637_v59 = vmax.f32 %v1302_v44, 0.0  ;;  %v829_v44 = vld [vmem:[%s1440_s5 + $0x38] sm:$0xff]  ;;  %v822_v60 = vld [vmem:[%s1440_s5] sm:$0xff] }
  0xfd   : > { %867 = vperm.xlu0 %1096, %v829_v44   ;;  %832 = vperm.xlu2 %1098, %v822_v60  }
 0x103   : > { %v550_v61 = vpop.f32.mrf.mxu0  ;;  %v615_v62 = vpop.f32.mrf.mxu1 }
 0x104   : > { %v654_v29 = vmax.f32 %v550_v61, 0.0  ;;  %v655_v30 = vmax.f32 %v615_v62, 0.0  ;;  %v670_v61 = vld [vmem:[%s1438_s3 + $0x10] sm:$0xff]  ;;  %v681_v62 = vld [vmem:[%s1439_s4 + $0x28] sm:$0xff] }
 0x105   : > { %711 = vperm.xlu2 %1098, %v681_v62  }
 0x10b   : > { %v553_v63 = vpop.f32.mrf.mxu0  ;;  %v618_v0 = vpop.f32.mrf.mxu1 }
 0x10c   : > { %v656_v27 = vmax.f32 %v553_v63, 0.0  ;;  %v657_v28 = vmax.f32 %v618_v0, 0.0  ;;  %v671_v63 = vld [vmem:[%s1438_s3 + $0x18] sm:$0xff]  ;;  %v826_v0 = vld [vmem:[%s1440_s5 + $0x20] sm:$0xff] }
 0x10d   : > { %852 = vperm.xlu2 %1098, %v826_v0  }
 0x113   : > { %v556_v1 = vpop.f32.mrf.mxu0  ;;  %v621_v2 = vpop.f32.mrf.mxu1 }
 0x114   : > { %v658_v24 = vmax.f32 %v556_v1, 0.0  ;;  %v659_v25 = vmax.f32 %v621_v2, 0.0  ;;  %v672_v1 = vld [vmem:[%s1438_s3 + $0x20] sm:$0xff]  ;;  %v828_v2 = vld [vmem:[%s1440_s5 + $0x30] sm:$0xff] }
 0x115   : > { %862 = vperm.xlu2 %1098, %v828_v2  }
 0x11b   : > { %v559_v3 = vpop.f32.mrf.mxu0  ;;  %v624_v4 = vpop.f32.mrf.mxu1 }
 0x11c   : > { %v660_v22 = vmax.f32 %v559_v3, 0.0  ;;  %v661_v23 = vmax.f32 %v624_v4, 0.0  ;;  %v673_v3 = vld [vmem:[%s1438_s3 + $0x28] sm:$0xff]  ;;  %v674_v4 = vld [vmem:[%s1438_s3 + $0x30] sm:$0xff] }
 0x123   : > { %v562_v6 = vpop.f32.mrf.mxu0  ;;  %v627_v7 = vpop.f32.mrf.mxu1 }
 0x124   : > { %v662_v19 = vmax.f32 %v562_v6, 0.0  ;;  %v663_v20 = vmax.f32 %v627_v7, 0.0  ;;  %v675_v6 = vld [vmem:[%s1438_s3 + $0x38] sm:$0xff] }
 0x12b   : > { %v565_v8 = vpop.f32.mrf.mxu0  ;;  %v630_v9 = vpop.f32.mrf.mxu1 }
 0x12c   : > { %v664_v17 = vmax.f32 %v565_v8, 0.0  ;;  %v665_v18 = vmax.f32 %v630_v9, 0.0 }
 0x133   : > { %v568_v12 = vpop.f32.mrf.mxu0  ;;  %v633_v13 = vpop.f32.mrf.mxu1 }
 0x134   : > { %v666_v14 = vmax.f32 %v568_v12, 0.0  ;;  %v667_v15 = vmax.f32 %v633_v13, 0.0  ;;  %v697_v12 = vpop.permute.xlu1 %696 }
 0x136   : > { %724 = vmatpush.msra.mxu2 %v666_v14  ;;  %765 = vmatpush.msra.mxu3 %v667_v15 }
 0x138   : > { %725 = vmatpush.msra.mxu2 %v664_v17  ;;  %766 = vmatpush.msra.mxu3 %v665_v18 }
 0x13a   : > { %726 = vmatpush.msra.mxu2 %v662_v19  ;;  %767 = vmatpush.msra.mxu3 %v663_v20 }
 0x13c   : > { %727 = vmatpush.msra.mxu2 %v660_v22  ;;  %768 = vmatpush.msra.mxu3 %v661_v23  ;;  %v702_v17 = vpop.permute.xlu1 %701 }
 0x13e   : > { %728 = vmatpush.msra.mxu2 %v658_v24  ;;  %769 = vmatpush.msra.mxu3 %v659_v25 }
 0x140   : > { %729 = vmatpush.msra.mxu2 %v656_v27  ;;  %770 = vmatpush.msra.mxu3 %v657_v28 }
 0x142   : > { %730 = vmatpush.msra.mxu2 %v654_v29  ;;  %771 = vmatpush.msra.mxu3 %v655_v30  ;;  %v848_v30 = vpop.permute.xlu0 %847 }
 0x144   : > { %731 = vmatpush.msra.mxu2 %v652_v32  ;;  %772 = vmatpush.msra.mxu3 %v653_v33  ;;  %v843_v24 = vpop.permute.xlu1 %842 }
 0x146   : > { %732 = vmatpush.msra.mxu2 %v650_v34  ;;  %773 = vmatpush.msra.mxu3 %v651_v35 }
 0x148   : > { %733 = vmatpush.msra.mxu2 %v648_v37  ;;  %774 = vmatpush.msra.mxu3 %v649_v38  ;;  %v707_v13 = vpop.permute.xlu2 %706 }
 0x14a   : > { %734 = vmatpush.msra.mxu2 %v646_v39  ;;  %775 = vmatpush.msra.mxu3 %v647_v40 }
 0x14c   : > { %735 = vmatpush.msra.mxu2 %v644_v42  ;;  %776 = vmatpush.msra.mxu3 %v645_v57 }
 0x14e   : > { %736 = vmatpush.msra.mxu2 %v642_v55  ;;  %777 = vmatpush.msra.mxu3 %v643_v56 }
 0x150   : > { %737 = vmatpush.msra.mxu2 %v640_v54  ;;  %778 = vmatpush.msra.mxu3 %v641_v58 }
 0x152   : > { %738 = vmatpush.msra.mxu2 %v638_v51  ;;  %779 = vmatpush.msra.mxu3 %v639_v52 }
 0x154   : > { %739 = vmatpush.msra.mxu2 %v636_v50  ;;  %780 = vmatpush.msra.mxu3 %v637_v59 }
 0x155   : > { %740 = vmatmul.f32.vlgmr.msra.gmra.mxu2 %v668_v47  ;;  %781 = vmatmul.f32.vlgmr.msra.gmra.mxu3 %v668_v47 }
 0x157   : > { %v833_v20 = vpop.permute.xlu2 %832  ;;  %v717_v41 = vpop.permute.xlu1 %716 }
 0x15d   : > { %743 = vmatmul.f32.gmra.mxu2 %v669_v46  ;;  %784 = vmatmul.f32.gmra.mxu3 %v669_v46 }
 0x15f   : > { %v712_v25 = vpop.permute.xlu2 %711 }
 0x165   : > { %746 = vmatmul.f32.gmra.mxu2 %v670_v61  ;;  %787 = vmatmul.f32.gmra.mxu3 %v670_v61 }
 0x167   : > { %v853_v53 = vpop.permute.xlu2 %852 }
 0x16d   : > { %749 = vmatmul.f32.gmra.mxu2 %v671_v63  ;;  %790 = vmatmul.f32.gmra.mxu3 %v671_v63 }
 0x175   : > { %752 = vmatmul.f32.gmra.mxu2 %v672_v1  ;;  %793 = vmatmul.f32.gmra.mxu3 %v672_v1  ;;  %v722_v1 = vpop.permute.xlu0 %721 }
 0x17d   : > { %755 = vmatmul.f32.gmra.mxu2 %v673_v3  ;;  %796 = vmatmul.f32.gmra.mxu3 %v673_v3 }
 0x185   : > { %758 = vmatmul.f32.gmra.mxu2 %v674_v4  ;;  %799 = vmatmul.f32.gmra.mxu3 %v674_v4 }
 0x18d   : > { %761 = vmatmul.f32.gmra.mxu2 %v675_v6  ;;  %802 = vmatmul.f32.gmra.mxu3 %v675_v6 }
 0x1d8   : > { %v741_v7 = vpop.f32.mrf.mxu2  ;;  %v782_v8 = vpop.f32.mrf.mxu3 }
 0x1d9   : > { %v742_v28 = vadd.f32 %v741_v7, %v687_v11  ;;  %v783_v29 = vadd.f32 %v782_v8, %v687_v11 }
 0x1db   : > { %v806_v39 = vmax.f32 %v742_v28, 0.0  ;;  %v807_v40 = vmax.f32 %v783_v29, 0.0 }
 0x1dd   : > { %v870_v49 = vmul.f32 %v833_v20, %v806_v39  ;;  %v871_v50 = vmul.f32 %v833_v20, %v807_v40 }
 0x1e0   : > { %v744_v9 = vpop.f32.mrf.mxu2  ;;  %v785_v10 = vpop.f32.mrf.mxu3 }
 0x1e1   : > { %v745_v26 = vadd.f32 %v744_v9, %v692_v16  ;;  %v786_v27 = vadd.f32 %v785_v10, %v692_v16  ;;  %v863_v16 = vpop.permute.xlu2 %862 }
 0x1e3   : > { %v808_v35 = vmax.f32 %v745_v26, 0.0  ;;  %v809_v36 = vmax.f32 %v786_v27, 0.0 }
 0x1e5   : > { %v872_v54 = vmul.f32 %v838_v21, %v808_v35  ;;  %v873_v58 = vmul.f32 %v838_v21, %v809_v36 }
 0x1e7   : > { %v886_v63 = vadd.f32 %v872_v54, %v870_v49  ;;  %v899_v0 = vadd.f32 %v873_v58, %v871_v50 }
 0x1e8   : > { %v747_v14 = vpop.f32.mrf.mxu2  ;;  %v788_v15 = vpop.f32.mrf.mxu3 }
 0x1e9   : > { %v748_v31 = vadd.f32 %v747_v14, %v697_v12  ;;  %v789_v32 = vadd.f32 %v788_v15, %v697_v12 }
 0x1eb   : > { %v810_v42 = vmax.f32 %v748_v31, 0.0  ;;  %v811_v57 = vmax.f32 %v789_v32, 0.0  ;;  %v868_v31 = vpop.permute.xlu0 %867 }
 0x1ed   : > { %v874_v45 = vmul.f32 %v843_v24, %v810_v42  ;;  %v875_v43 = vmul.f32 %v843_v24, %v811_v57 }
 0x1ef   : > { %v887_v7 = vadd.f32 %v886_v63, %v874_v45  ;;  %v900_v8 = vadd.f32 %v899_v0, %v875_v43 }
 0x1f0   : > { %v750_v18 = vpop.f32.mrf.mxu2  ;;  %v791_v19 = vpop.f32.mrf.mxu3 }
 0x1f1   : > { %v751_v37 = vadd.f32 %v750_v18, %v702_v17  ;;  %v792_v38 = vadd.f32 %v791_v19, %v702_v17 }
 0x1f3   : > { %v812_v51 = vmax.f32 %v751_v37, 0.0  ;;  %v813_v52 = vmax.f32 %v792_v38, 0.0 }
 0x1f5   : > { %v876_v2 = vmul.f32 %v848_v30, %v812_v51  ;;  %v877_v3 = vmul.f32 %v848_v30, %v813_v52 }
 0x1f7   : > { %v888_v14 = vadd.f32 %v887_v7, %v876_v2  ;;  %v901_v15 = vadd.f32 %v900_v8, %v877_v3 }
 0x1f8   : > { %v753_v22 = vpop.f32.mrf.mxu2  ;;  %v794_v23 = vpop.f32.mrf.mxu3 }
 0x1f9   : > { %v754_v55 = vadd.f32 %v753_v22, %v707_v13  ;;  %v795_v56 = vadd.f32 %v794_v23, %v707_v13  ;;  %v858_v13 = vpop.permute.xlu1 %857 }
 0x1fb   : > { %v814_v44 = vmax.f32 %v754_v55, 0.0  ;;  %v815_v46 = vmax.f32 %v795_v56, 0.0 }
 0x1fd   : > { %v878_v9 = vmul.f32 %v853_v53, %v814_v44  ;;  %v879_v10 = vmul.f32 %v853_v53, %v815_v46 }
 0x1ff   : > { %v889_v19 = vadd.f32 %v888_v14, %v878_v9  ;;  %v902_v20 = vadd.f32 %v901_v15, %v879_v10 }
 0x200   : > { %v756_v33 = vpop.f32.mrf.mxu2  ;;  %v797_v34 = vpop.f32.mrf.mxu3 }
 0x201   : > { %v757_v59 = vadd.f32 %v756_v33, %v712_v25  ;;  %v798_v47 = vadd.f32 %v797_v34, %v712_v25  ;;  %v916_v53 = vpop.permute.xlu1 %915 }
 0x202   : > { %v918_v51 = vperm.slane %v916_v53, 0 }
 0x203   : > { %v816_v4 = vmax.f32 %v757_v59, 0.0  ;;  %v817_v6 = vmax.f32 %v798_v47, 0.0 }
 0x205   : > { %v880_v17 = vmul.f32 %v858_v13, %v816_v4  ;;  %v881_v18 = vmul.f32 %v858_v13, %v817_v6 }
 0x207   : > { %v890_v27 = vadd.f32 %v889_v19, %v880_v17  ;;  %v903_v28 = vadd.f32 %v902_v20, %v881_v18 }
 0x208   : > { %v759_v48 = vpop.f32.mrf.mxu2  ;;  %v800_v60 = vpop.f32.mrf.mxu3 }
 0x209   : > { %v760_v61 = vadd.f32 %v759_v48, %v717_v41  ;;  %v801_v62 = vadd.f32 %v800_v60, %v717_v41 }
 0x20b   : > { %v818_v11 = vmax.f32 %v760_v61, 0.0  ;;  %v819_v12 = vmax.f32 %v801_v62, 0.0 }
 0x20d   : > { %v882_v23 = vmul.f32 %v863_v16, %v818_v11  ;;  %v883_v24 = vmul.f32 %v863_v16, %v819_v12 }
 0x20f   : > { %v891_v32 = vadd.f32 %v890_v27, %v882_v23  ;;  %v904_v33 = vadd.f32 %v903_v28, %v883_v24 }
 0x210   : > { %v762_v21 = vpop.f32.mrf.mxu2  ;;  %v803_v22 = vpop.f32.mrf.mxu3 }
 0x211   : > { %v763_v25 = vadd.f32 %v762_v21, %v722_v1  ;;  %v804_v26 = vadd.f32 %v803_v22, %v722_v1 }
 0x213   : > { %v820_v29 = vmax.f32 %v763_v25, 0.0  ;;  %v821_v30 = vmax.f32 %v804_v26, 0.0 }
 0x215   : > { %v884_v34 = vmul.f32 %v868_v31, %v820_v29  ;;  %v885_v35 = vmul.f32 %v868_v31, %v821_v30 }
 0x217   : > { %v892_v36 = vadd.f32 %v891_v32, %v884_v34  ;;  %v905_v37 = vadd.f32 %v904_v33, %v885_v35 }
 0x219   : > { %v893_v38 = vrot.slane %v892_v36, 4  ;;  %v906_v39 = vrot.slane %v905_v37, 4 }
 0x21b   : > { %v894_v40 = vadd.f32 %v893_v38, %v892_v36  ;;  %v907_v41 = vadd.f32 %v906_v39, %v905_v37 }
 0x21d   : > { %v895_v42 = vrot.slane %v894_v40, 2  ;;  %v908_v57 = vrot.slane %v907_v41, 2 }
 0x21f   : > { %v896_v55 = vadd.f32 %v895_v42, %v894_v40  ;;  %v909_v56 = vadd.f32 %v908_v57, %v907_v41 }
 0x221   : > { %v897_v54 = vrot.slane %v896_v55, 1  ;;  %v910_v58 = vrot.slane %v909_v56, 1 }
 0x223   : > { %v898_v52 = vadd.f32 %v897_v54, %v896_v55  ;;  %v911_v49 = vadd.f32 %v910_v58, %v909_v56 }
 0x225   : > { %v920_v50 = vadd.f32 %v918_v51, %v911_v49  ;;  %v919_v59 = vadd.f32 %v918_v51, %v898_v52 }
 0x227   : > { %v923_v47 = vrot.slane %v920_v50, 7 }
 0x229   : > { %v925_v45 = vsel %vm924_vm5, %v919_v59, %v923_v47 }
 0x22a   : > { %931 = vst.msk [vmem:[%s327_s28] sm:$0x3] %vm929_vm6, %v925_v45 }
 0x22b PF: > { %p16_p9 = scmp.ge.s32.totalorder %s1185_s29, 4   ;;  %s1443_s26 = smov %s1117_s27 }
 0x22c   : > { %s1444_s27 = smov %s1194_s9  ;;  %s1445_s28 = smov %s1185_s29 }
 0x22d   :  { %18 = sbr.rel (!%p16_p9) target bundleno = 5 (0x5), region = 112 }

</bundles_post_ra>
